<compile_context>
chip_gen: v7x
topology: tpu7x:2x2x1
jax: 0.10.0
libtpu: 0.0.40
codegen_flags: <defaults>
</compile_context>

<pallas_src>
import jax
import jax.numpy as jnp
from jax.experimental import pallas as pl
from jax.experimental.pallas import tpu as pltpu


def ann_kernel(x_ref, w1_ref, b1_ref, w2_ref, b2_ref, o_ref):
    # First layer in transposed (lane-dense) orientation:
    #   hT = W1 @ x_block^T : (12, in_dim) x (in_dim, TILE_N) -> (12, TILE_N)
    # Expressed as a dot_general contracting in_dim of both operands so Mosaic
    # lowers it as a single trans-b MXU matmul (no explicit transpose op).
    hT = jax.lax.dot_general(
        w1_ref[...], x_ref[...],
        dimension_numbers=(((1,), (1,)), ((), ())),
        preferred_element_type=jnp.float32,
    )
    hT = jnp.tanh(hT + b1_ref[...])            # (12, TILE_N): lane-dense EUP tanh

    # BatchNorm (eval) folded into the output head (done in the wrapper).
    # Second layer as a skinny MXU matmul: (1,12) x (12,TILE_N) -> (1,TILE_N).
    out_row = jnp.dot(w2_ref[...], hT, preferred_element_type=jnp.float32)
    out_row = out_row + b2_ref[...]
    o_ref[...] = out_row.astype(o_ref.dtype)   # lane-dense (1, TILE_N) store


def _round_up(x, m):
    return (x + m - 1) // m * m


def _choose_tile_n(n, in_dim, itemsize, x_tile_bytes=8 << 20, max_rows=65536):
    """Largest multiple-of-128 row tile whose *padded* VMEM footprint per
    buffer is ~8 MiB (in_dim is lane-padded to a multiple of 128), so the
    double-buffered x stream stays well under the scoped VMEM limit on every
    generation (incl. v7x), while amortizing per-grid-step overhead.  If one
    tile would swallow the whole batch, split into >=2 tiles so both v7x
    TensorCores get work from the 'parallel' grid axis."""
    padded_in = _round_up(in_dim, 128)                 # lane padding of x block
    tile = x_tile_bytes // max(1, padded_in * itemsize)
    tile = max(128, min(max_rows, (tile // 128) * 128))
    n_pad128 = _round_up(n, 128)
    if tile >= n_pad128 and n_pad128 > 128:
        # Single tile would cover all of N -> halve so the grid has >= 2 tiles.
        tile = _round_up(-(-n_pad128 // 2), 128)
    tile = min(tile, n_pad128)
    return max(tile, 128)


def ann_forward(x, params):
    (w1, b1, gamma, beta, running_mean, running_var, w2, b2) = params
    n, in_dim = x.shape
    hidden = w1.shape[0]                       # 12
    eps = jnp.float32(1e-5)

    # Fold eval-mode BatchNorm1d into the output head (mathematically exact):
    #   BN(z) = z * s + t,  s = gamma / sqrt(var + eps),  t = beta - mean * s
    #   out   = BN(tanh(x W1^T + b1)) @ w2^T + b2
    #         = tanh(x W1^T + b1) @ (s * w2)^T + (t . w2 + b2)
    s = gamma / jnp.sqrt(running_var + eps)
    t = beta - running_mean * s
    w2_row = w2.reshape(hidden)                        # (12,)
    w2_eff = (s * w2_row).reshape(1, hidden)           # (1, 12) for (1,12)@(12,T)
    b2_eff = (b2 + jnp.dot(t, w2_row)).reshape(1, 1)   # (1, 1)
    b1_col = b1.reshape(hidden, 1)                     # (12, 1)

    itemsize = x.dtype.itemsize
    tile_n = _choose_tile_n(n, in_dim, itemsize)
    n_pad = _round_up(n, tile_n)
    num_tiles = n_pad // tile_n
    if n_pad != n:
        x = jnp.pad(x, ((0, n_pad - n), (0, 0)))

    # VMEM budget: 2 x-buffers (lane-padded) + hT temp + params + output,
    # with headroom; capped at 48 MiB so it fits v7x's 64 MiB physical VMEM.
    padded_in = _round_up(in_dim, 128)
    x_block_bytes = tile_n * padded_in * itemsize
    vmem_limit = int(min(48 << 20, max(32 << 20, 2 * x_block_bytes + (8 << 20))))

    cost = pl.CostEstimate(
        flops=2 * n_pad * in_dim * hidden + 2 * n_pad * hidden + 2 * n_pad,
        transcendentals=n_pad * hidden,
        bytes_accessed=(n_pad * in_dim + n_pad) * itemsize
        + (in_dim * hidden + 2 * hidden + 1) * 4,
    )

    out2d = pl.pallas_call(
        ann_kernel,
        out_shape=jax.ShapeDtypeStruct((1, n_pad), x.dtype),
        grid=(num_tiles,),
        in_specs=[
            pl.BlockSpec((tile_n, in_dim), lambda i: (i, 0)),   # streamed x tiles
            pl.BlockSpec((hidden, in_dim), lambda i: (0, 0)),   # resident W1
            pl.BlockSpec((hidden, 1), lambda i: (0, 0)),        # resident b1
            pl.BlockSpec((1, hidden), lambda i: (0, 0)),        # resident folded w2
            pl.BlockSpec((1, 1), lambda i: (0, 0)),             # resident folded b2
        ],
        out_specs=pl.BlockSpec((1, tile_n), lambda i: (0, i)),  # lane-dense output
        compiler_params=pltpu.CompilerParams(
            dimension_semantics=("parallel",),   # v7x: shard batch tiles over 2 TCs
            vmem_limit_bytes=vmem_limit,
        ),
        cost_estimate=cost,
    )(x, w1, b1_col, w2_eff, b2_eff)

    return out2d[0, :n].reshape(n, 1)


def init_params(key, in_dim, hidden=12):
    """Deterministic synthetic parameters matching the PyTorch module's shapes."""
    k1, k2, k3, k4, k5, k6 = jax.random.split(key, 6)
    # nn.Linear(in_dim, 12): weight (12, in_dim), bias (12,)
    bound1 = 1.0 / (in_dim ** 0.5)
    w1 = jax.random.uniform(k1, (hidden, in_dim), jnp.float32, -bound1, bound1)
    b1 = jax.random.uniform(k2, (hidden,), jnp.float32, -bound1, bound1)
    # nn.BatchNorm1d(12): gamma, beta, running_mean, running_var
    gamma = jnp.ones((hidden,), jnp.float32)
    beta = jnp.zeros((hidden,), jnp.float32)
    running_mean = 0.1 * jax.random.normal(k3, (hidden,), jnp.float32)
    running_var = 1.0 + 0.05 * jax.random.uniform(k4, (hidden,), jnp.float32)
    # nn.Linear(12, 1): weight (1, 12), bias (1,)
    bound2 = 1.0 / (hidden ** 0.5)
    w2 = jax.random.uniform(k5, (1, hidden), jnp.float32, -bound2, bound2)
    b2 = jax.random.uniform(k6, (1,), jnp.float32, -bound2, bound2)
    return (w1, b1, gamma, beta, running_mean, running_var, w2, b2)


def ann_reference(x, params):
    """Pure-JAX reference for correctness checking (eval-mode BatchNorm)."""
    (w1, b1, gamma, beta, running_mean, running_var, w2, b2) = params
    h = x @ w1.T + b1
    h = jnp.tanh(h)
    h = (h - running_mean) / jnp.sqrt(running_var + 1e-5) * gamma + beta
    return h @ w2.T + b2


if __name__ == "__main__":
    key = jax.random.PRNGKey(0)
    k_x, k_p = jax.random.split(key)

    N, in_dim = 8, 32
    x = jax.random.normal(k_x, (N, in_dim), jnp.float32)
    params = init_params(k_p, in_dim)

    out = jax.block_until_ready(ann_forward(x, params))
    ref = ann_reference(x, params)

    assert out.shape == (N, 1), out.shape
    assert jnp.allclose(out, ref, atol=2e-5, rtol=2e-5), (out, ref)

    # Also exercise a batch large enough to take multiple grid tiles / the
    # >=2-tile split path (still small enough for a quick run).
    N2 = 300
    x2 = jax.random.normal(jax.random.PRNGKey(1), (N2, in_dim), jnp.float32)
    out2 = jax.block_until_ready(ann_forward(x2, params))
    ref2 = ann_reference(x2, params)
    assert out2.shape == (N2, 1), out2.shape
    assert jnp.allclose(out2, ref2, atol=2e-5, rtol=2e-5)

    print("KERNEL_OK")
</pallas_src>

<mosaic_0001>
module attributes {stable_mosaic.version = 11 : i64} {
  func.func @ann_kernel(%arg0: i32, %arg1: memref<128x32xf32, #tpu.memory_space<vmem>>, %arg2: memref<12x32xf32, #tpu.memory_space<vmem>>, %arg3: memref<12x1xf32, #tpu.memory_space<vmem>>, %arg4: memref<1x12xf32, #tpu.memory_space<vmem>>, %arg5: memref<1x1xf32, #tpu.memory_space<vmem>>, %arg6: memref<1x128xf32, #tpu.memory_space<vmem>>) attributes {dimension_semantics = [#tpu.dimension_semantics<parallel>], iteration_bounds = array<i64: 1>, scalar_prefetch = 0 : i64, scratch_operands = 0 : i64, tpu.core_type = #tpu.core_type<tc>, window_params = [{transform_indices = @transform_0, window_bounds = array<i64: 128, 32>}, {pipeline_mode = #tpu.pipeline_mode<synchronous>, transform_indices = @transform_1, window_bounds = array<i64: 12, 32>}, {pipeline_mode = #tpu.pipeline_mode<synchronous>, transform_indices = @transform_2, window_bounds = array<i64: 12, 1>}, {pipeline_mode = #tpu.pipeline_mode<synchronous>, transform_indices = @transform_3, window_bounds = array<i64: 1, 12>}, {pipeline_mode = #tpu.pipeline_mode<synchronous>, transform_indices = @transform_4, window_bounds = array<i64: 1, 1>}, {transform_indices = @transform_5, window_bounds = array<i64: 1, 128>}]} {
    %c0 = arith.constant 0 : index
    %c0_0 = arith.constant 0 : index
    %0 = vector.load %arg2[%c0, %c0_0] : memref<12x32xf32, #tpu.memory_space<vmem>>, vector<12x32xf32>
    %c0_1 = arith.constant 0 : index
    %c0_2 = arith.constant 0 : index
    %1 = vector.load %arg1[%c0_1, %c0_2] : memref<128x32xf32, #tpu.memory_space<vmem>>, vector<128x32xf32>
    %cst = arith.constant dense<0.000000e+00> : vector<12x128xf32>
    %2 = tpu.matmul %0, %1, %cst {dimension_numbers = #tpu.dot_dimension_numbers<[1], [1], [0], [0], [0, 0, 1, 0], [], []>} : vector<12x32xf32>, vector<128x32xf32>, vector<12x128xf32> -> vector<12x128xf32>
    %c0_3 = arith.constant 0 : index
    %c0_4 = arith.constant 0 : index
    %3 = vector.load %arg3[%c0_3, %c0_4] : memref<12x1xf32, #tpu.memory_space<vmem>>, vector<12x1xf32>
    %4 = vector.broadcast %3 : vector<12x1xf32> to vector<12x128xf32>
    %5 = arith.addf %2, %4 : vector<12x128xf32>
    %6 = math.tanh %5 : vector<12x128xf32>
    %c0_5 = arith.constant 0 : index
    %c0_6 = arith.constant 0 : index
    %7 = vector.load %arg4[%c0_5, %c0_6] : memref<1x12xf32, #tpu.memory_space<vmem>>, vector<1x12xf32>
    %cst_7 = arith.constant dense<0.000000e+00> : vector<1x128xf32>
    %8 = tpu.matmul %7, %6, %cst_7 {dimension_numbers = #tpu.dot_dimension_numbers<[1], [0], [0], [1], [0, 0, 1, 1], [], []>} : vector<1x12xf32>, vector<12x128xf32>, vector<1x128xf32> -> vector<1x128xf32>
    %c0_8 = arith.constant 0 : index
    %c0_9 = arith.constant 0 : index
    %9 = vector.load %arg5[%c0_8, %c0_9] : memref<1x1xf32, #tpu.memory_space<vmem>>, vector<1x1xf32>
    %10 = vector.broadcast %9 : vector<1x1xf32> to vector<1x128xf32>
    %11 = arith.addf %8, %10 : vector<1x128xf32>
    %c0_10 = arith.constant 0 : index
    %c0_11 = arith.constant 0 : index
    %12 = vector.load %arg6[%c0_10, %c0_11] : memref<1x128xf32, #tpu.memory_space<vmem>>, vector<1x128xf32>
    tpu.vector_store %arg6[%c0_10, %c0_11], %11 {strides = array<i32>} : memref<1x128xf32, #tpu.memory_space<vmem>>, vector<1x128xf32>,
    return
  }
  func.func @transform_0(%arg0: i32) -> (i32, i32) {
    %c0_i32 = arith.constant 0 : i32
    %c0_i32_0 = arith.constant 0 : i32
    return %arg0, %c0_i32 : i32, i32
  }
  func.func @transform_1(%arg0: i32) -> (i32, i32) {
    %c0_i32 = arith.constant 0 : i32
    %c0_i32_0 = arith.constant 0 : i32
    %c0_i32_1 = arith.constant 0 : i32
    return %c0_i32, %c0_i32_0 : i32, i32
  }
  func.func @transform_2(%arg0: i32) -> (i32, i32) {
    %c0_i32 = arith.constant 0 : i32
    %c0_i32_0 = arith.constant 0 : i32
    %c0_i32_1 = arith.constant 0 : i32
    return %c0_i32, %c0_i32_0 : i32, i32
  }
  func.func @transform_3(%arg0: i32) -> (i32, i32) {
    %c0_i32 = arith.constant 0 : i32
    %c0_i32_0 = arith.constant 0 : i32
    %c0_i32_1 = arith.constant 0 : i32
    return %c0_i32, %c0_i32_0 : i32, i32
  }
  func.func @transform_4(%arg0: i32) -> (i32, i32) {
    %c0_i32 = arith.constant 0 : i32
    %c0_i32_0 = arith.constant 0 : i32
    %c0_i32_1 = arith.constant 0 : i32
    return %c0_i32, %c0_i32_0 : i32, i32
  }
  func.func @transform_5(%arg0: i32) -> (i32, i32) {
    %c0_i32 = arith.constant 0 : i32
    %c0_i32_0 = arith.constant 0 : i32
    return %c0_i32, %arg0 : i32, i32
  }
}

</mosaic_0001>

<bundles_post_ra>
// kernel: tpu_custom_call.1
= control target key start
LH: loop header
LB: loop body
LE: loop exit
PB: predicated region body
PF: predicated region fallthrough
CT: control target
= control target key end

     0   :  { %s614_s0 = inlined_call_operand.vmem [shape: f32[128,32], index: 0, kind: input, shape index: {}]   ;;  %s615_s1 = inlined_call_operand.vmem [shape: f32[12,32], index: 1, kind: input, shape index: {}]   ;;  %s616_s2 = inlined_call_operand.vmem [shape: f32[12,1], index: 2, kind: input, shape index: {}]   ;;  %s617_s3 = inlined_call_operand.vmem [shape: f32[1,12], index: 3, kind: input, shape index: {}]   ;;  %s618_s4 = inlined_call_operand.<no memory space> [shape: f32[1,1], index: 4, kind: input, shape index: {}]   ;;  %s619_s5 = inlined_call_operand.hbm [shape: f32[1,128], index: 5, kind: output, shape index: {}]  }
   0x1   :  { %v10_v0 = vstv %s618_s4 }
   0x2   :  { %11 = vst [vmem:[#allocation2] sm:$0x1] %v10_v0 }
   0x3   :  { %v25_v1 = vld [vmem:[%s614_s0] sm:$0xff]  ;;  %v26_v2 = vld [vmem:[%s614_s0 + $0x8] sm:$0xff]  ;;  %vm53_vm0 = vcmask 261120   ;;  %v27_v3 = vld [vmem:[%s614_s0 + $0x10] sm:$0xff]  ;;  %v460_v7 = vmov 0  }
   0x4   :  { %v372_v4 = vpack.c.bf16 %v26_v2, %v25_v1  ;;  %vm510_vm1 = vmpackc.low %vm53_vm0, %vm53_vm0  ;;  %v28_v6 = vld [vmem:[%s614_s0 + $0x18] sm:$0xff]  ;;  %430 = vset.pattern.permute.xlu0 %v460_v7  ;;  %431 = vset.pattern.permute.xlu1 %v460_v7  ;;  %v23_v9 = vld [vmem:[%s615_s1] sm:$0xff] }
   0x5   :  { %v378_v8 = vpack.c.bf16 %v28_v6, %v27_v3  ;;  %v29_v10 = vld [vmem:[%s614_s0 + $0x20] sm:$0xff]  ;;  %v30_v11 = vld [vmem:[%s614_s0 + $0x28] sm:$0xff]  ;;  %362 = vmatprep.mubr.msk.f32.mxu0 %vm53_vm0, %v23_v9 }
   0x6   :  { %374 = vmatprep.subr.msk.bf16.mxu0 %vm510_vm1, %v372_v4  ;;  %v41_v12 = vld [vmem:[%s616_s2] sm:$0xff] }
   0x7   :  { %377 = vmatpush3.bf16.xpose.msk.msra.mxu0 %vm510_vm1, %v372_v4  ;;  %45 = vperm.xlu0 %430, %v41_v12  }
   0x8   :  { %380 = vmatprep.subr.msk.bf16.mxu0 %vm510_vm1, %v378_v8 }
   0x9   :  { %12 = vsyncpa [#allocation4], 0  ;;  %v42_v13 = vld [vmem:[%s616_s2 + $0x8] sm:$0xf]  ;;  %v384_v14 = vpack.c.bf16 %v30_v11, %v29_v10  ;;  %v31_v15 = vld [vmem:[%s614_s0 + $0x30] sm:$0xff]  ;;  %v461_v31 = vmov 0.0|0.0   ;;  %v192_v44 = vlaneseq }
   0xa   :  { %v32_v16 = vld [vmem:[%s614_s0 + $0x38] sm:$0xff]  ;;  %v33_v18 = vld [vmem:[%s614_s0 + $0x40] sm:$0xff]  ;;  %v34_v19 = vld [vmem:[%s614_s0 + $0x48] sm:$0xff]  ;;  %420 = vmatprep.subr.bf16.mxu1 %v461_v31  ;;  %vm462_vm2 = vmmov 0   ;;  %v463_v32 = vmov 0.0   ;;  %vm200_vm3 = vcmask 1043456  }
   0xb   :  { %50 = vperm.xlu0 %430, %v42_v13   ;;  %v390_v17 = vpack.c.bf16 %v32_v16, %v31_v15  ;;  %v396_v20 = vpack.c.bf16 %v34_v19, %v33_v18  ;;  %v35_v21 = vld [vmem:[%s614_s0 + $0x50] sm:$0xff]  ;;  %v36_v22 = vld [vmem:[%s614_s0 + $0x58] sm:$0xff]  ;;  %v37_v24 = vld [vmem:[%s614_s0 + $0x60] sm:$0xff]  ;;  %369 = vmatprep.mubr.msk.f32.mxu1 %vm462_vm2, %v463_v32  ;;  %vm464_vm4 = vmmov 1   ;;  %vm196_vm6 = vcmask 97280   ;;  %s465_s7 = smov [#allocation3]  }
   0xc   :  { %v402_v23 = vpack.c.bf16 %v36_v22, %v35_v21  ;;  %v38_v25 = vld [vmem:[%s614_s0 + $0x68] sm:$0xff]  ;;  %v39_v27 = vld [vmem:[%s614_s0 + $0x70] sm:$0xff]  ;;  %v40_v28 = vld [vmem:[%s614_s0 + $0x78] sm:$0xff]  ;;  %v193_v45 = vshrl.u32 %v192_v44, 7  ;;  %s281_s8 = sshll.u32 %s465_s7, 4  ;;  %s282_s8 = int_to_ptr.vmem [resolvable:$true] %s281_s8 }
   0xd   :  { %v408_v26 = vpack.c.bf16 %v38_v25, %v37_v24  ;;  %v414_v29 = vpack.c.bf16 %v40_v28, %v39_v27  ;;  %v24_v30 = vld [vmem:[%s615_s1 + $0x8] sm:$0xf]  ;;  %v186_v33 = vld [vmem:[#allocation2] sm:$0x1]  ;;  %vm422_vm5 = vmpackc.low %vm200_vm3, %vm464_vm4  ;;  %s436_s9 = scalar_lea.vmem %s282_s8, 16  ;;  %s440_s10 = scalar_lea.vmem %s282_s8, 32 }
   0xe   :  { %189 = vperm.xlu1 %431, %v186_v33   ;;  %v185_v43 = vld [vmem:[%s617_s3] sm:$0x1]  ;;  %v194_v46 = vsub.s32 0, %v193_v45  ;;  %p437_p0 = scmp.ne.s32.totalorder %s282_s8, %s436_s9  ;;  %p441_p1 = scmp.lt.s32.totalorder %s282_s8, %s282_s8 }
   0xf   :  { %383 = vmatpush3.bf16.xpose.msk.msra.mxu0 %vm510_vm1, %v378_v8  ;;  %p442_p2 = scmp.lt.s32.totalorder %s440_s10, %s436_s9 }
  0x10   :  { %386 = vmatprep.subr.msk.bf16.mxu0 %vm510_vm1, %v384_v14 }
  0x11   :  { %p443_p3 = por %p442_p2, %p441_p1 }
  0x13   :  { %p444_p4 = pnand %p443_p3, %p437_p0 }
  0x17   :  { %389 = vmatpush3.bf16.xpose.msk.msra.mxu0 %vm510_vm1, %v384_v14 }
  0x18   :  { %392 = vmatprep.subr.msk.bf16.mxu0 %vm510_vm1, %v390_v17 }
  0x1f   :  { %395 = vmatpush3.bf16.xpose.msk.msra.mxu0 %vm510_vm1, %v390_v17 }
  0x20   :  { %398 = vmatprep.subr.msk.bf16.mxu0 %vm510_vm1, %v396_v20 }
  0x27   :  { %401 = vmatpush3.bf16.xpose.msk.msra.mxu0 %vm510_vm1, %v396_v20 }
  0x28   :  { %404 = vmatprep.subr.msk.bf16.mxu0 %vm510_vm1, %v402_v23 }
  0x2f   :  { %407 = vmatpush3.bf16.xpose.msk.msra.mxu0 %vm510_vm1, %v402_v23 }
  0x30   :  { %410 = vmatprep.subr.msk.bf16.mxu0 %vm510_vm1, %v408_v26 }
  0x37   :  { %413 = vmatpush3.bf16.xpose.msk.msra.mxu0 %vm510_vm1, %v408_v26 }
  0x38   :  { %416 = vmatprep.subr.msk.bf16.mxu0 %vm510_vm1, %v414_v29 }
  0x3f   :  { %419 = vmatpush3.bf16.xpose.msk.msra.mxu0 %vm510_vm1, %v414_v29 }
  0x46   :  { %363 = vmatmul.mubr.msk.f32.vlgmr.msra.gmra.mrb[0].mxu0 %vm53_vm0, %v24_v30 }
  0x86   :  { %v46_v34 = vpop.permute.xlu0 %45 }
  0x8a   :  { %v51_v35 = vpop.permute.xlu0 %50 }
  0x8d   :  { %v190_v47 = vpop.permute.xlu1 %189 }
  0x8e   :  { %v195_v48 = vrot.slane %v190_v47, %v194_v46 }
 0x119   :  { %v364_v36 = vpop.f32.mrb[0].mxu0 }
 0x11a   :  { %v180_v37 = vadd.f32 %v364_v36, %v51_v35  ;;  %v174_v38 = vpop.f32.mrb[1].mxu0 }
 0x11b   :  { %v175_v39 = vadd.f32 %v174_v38, %v46_v34 }
 0x11c   :  { %432 = vtanh.f32 %v180_v37 }
 0x11d   :  { %434 = vtanh.f32 %v175_v39 }
 0x126   :  { %v433_v40 = vpop.eup %432 }
 0x127   :  { %v435_v41 = vpop.eup %434 }
 0x128   :  { %v421_v42 = vpack.c.bf16 %v433_v40, %v435_v41 }
 0x12a   :  { %423 = vmatpush3.bf16.msk.msra.mxu1 %vm422_vm5, %v421_v42 }
 0x12d   :  { %370 = vmatmul.mubr.msk.f32.vlgmr.msra.gmra.mrb[0].mxu1 %vm196_vm6, %v185_v43 }
 0x200   :  { %v270_v49 = vpop.f32.mrb[0].mxu1 }
 0x201   :  { %v271_v50 = vadd.f32 %v270_v49, %v195_v48  ;;  %v371_v51 = vpop.f32.mrb[1].mxu1 }
 0x203   :  { %274 = vst [vmem:[#allocation3] sm:$0x1] %v271_v50 }
 0x204   :  { %447 = shalt.err (!%p444_p4)
}
 0x205   :  { %s448_s12 = scalar_lea.hbm %s619_s5, 16 }
 0x206   :  { %p449_p5 = scmp.ne.s32.totalorder %s619_s5, %s448_s12  ;;  %p452_p6 = scmp.lt.u32.totalorder %s448_s12, %s619_s5 }
 0x208   :  { %p454_p7 = pnand %p452_p6, %p449_p5 }
 0x20a   :  { %457 = shalt.err (!%p454_p7)
}
 0x20b   :  { %284 = dma.vmem_to_hbm [thread:$0]  %s282_s8, 16, %s619_s5, [#allocation4]  }
 0x20c   :  { %458 = dma.done.wait [#allocation4], 16  }
 0x20d   :  { %459 = vsyncadd [#allocation4], 4294967280 }
 0x20e   :  { %288 = vsyncpa [#allocation4], 1 }

</bundles_post_ra>
